<compile_context>
chip_gen: v6e
topology: v6e:2x2x1
jax: 0.10.0
libtpu: 0.0.40
codegen_flags: <defaults>
</compile_context>

<pallas_src>
import jax
import jax.numpy as jnp
from jax.experimental import pallas as pl
from jax.experimental.pallas import tpu as pltpu


def _linear_kernel(x_ref, w_ref, b_ref, o_ref):
    """o = w @ x.T + b, written lane-dense as [O, TB].

    x_ref: [TB, F] f32 (or bf16) activations -- cast to bf16 in-body, the VPU
           cast hides under the x DMA.
    w_ref: [O, F] bf16, native PyTorch [out, in] layout (lane-dense on F).
    b_ref: [O, 1] f32 bias.
    o_ref: [O, TB] f32 output (lane-dense on the batch dim -> unmasked stores).
    """
    x_bf = x_ref[...].astype(jnp.bfloat16)
    # Contract the last (lane-dense) dim of BOTH operands: [O,F] x [TB,F] -> [O,TB].
    acc = jax.lax.dot_general(
        w_ref[...],
        x_bf,
        dimension_numbers=(((1,), (1,)), ((), ())),
        preferred_element_type=jnp.float32,
    )
    o_ref[...] = (acc + b_ref[...]).astype(o_ref.dtype)


def binary_classifier_forward(x, w, b, *, block_b=1024, small_batch_rows=128):
    """y = x @ w.T + b  (PyTorch self.fc(x); w in native [out, in] layout)."""
    B, F = x.shape
    O, F_w = w.shape
    assert F == F_w, (F, F_w)

    w_bf = w.astype(jnp.bfloat16)             # tiny [O, F]; one-time, VMEM-resident
    b2 = b.reshape(O, 1).astype(jnp.float32)  # broadcast over the lane (batch) dim

    cost = pl.CostEstimate(
        flops=2 * B * F * O,
        transcendentals=0,
        bytes_accessed=B * F * x.dtype.itemsize + O * F * 2 + O * 4 + B * O * 4,
    )
    out_shape = jax.ShapeDtypeStruct((O, B), jnp.float32)

    if B <= small_batch_rows:
        # Truly tiny problem: single whole-array VMEM block, no grid.
        out_t = pl.pallas_call(
            _linear_kernel,
            out_shape=out_shape,
            in_specs=[
                pl.BlockSpec(memory_space=pltpu.MemorySpace.VMEM),
                pl.BlockSpec(memory_space=pltpu.MemorySpace.VMEM),
                pl.BlockSpec(memory_space=pltpu.MemorySpace.VMEM),
            ],
            out_specs=pl.BlockSpec(memory_space=pltpu.MemorySpace.VMEM),
            cost_estimate=cost,
        )(x, w_bf, b2)
        return out_t.T  # [B, O]

    # Pipelined path: tile only the batch dim; weight/bias blocks are constant
    # across the grid (stay VMEM-resident), x blocks are double-buffered.
    block_b = max(8, min(block_b, (B // 8) * 8))   # sublane-aligned, <= B
    grid = (pl.cdiv(B, block_b),)                  # ragged last block OK

    # Double-buffered f32 x block is the dominant VMEM cost; leave headroom
    # under v7x's 64 MiB physical ceiling.
    x_block_bytes = block_b * F * x.dtype.itemsize
    vmem_limit = int(min(48 << 20, max(32 << 20, 2 * x_block_bytes + (8 << 20))))

    out_t = pl.pallas_call(
        _linear_kernel,
        out_shape=out_shape,
        grid=grid,
        in_specs=[
            pl.BlockSpec((block_b, F), lambda i: (i, 0)),   # streamed activations
            pl.BlockSpec((O, F), lambda i: (0, 0)),          # constant weight
            pl.BlockSpec((O, 1), lambda i: (0, 0)),          # constant bias
        ],
        out_specs=pl.BlockSpec((O, block_b), lambda i: (0, i)),  # lane-dense output
        compiler_params=pltpu.CompilerParams(
            # Independent batch blocks -> shard across TensorCores on v7x;
            # no-op on single-TC v5e/v6e.
            dimension_semantics=("parallel",),
            vmem_limit_bytes=vmem_limit,
        ),
        cost_estimate=cost,
    )(x, w_bf, b2)
    return out_t.T  # [B, O]


def init_params(key, input_size=4096, out_features=3):
    # Deterministic init mimicking PyTorch nn.Linear default:
    # U(-1/sqrt(in), 1/sqrt(in)) for both weight and bias.
    kw, kb = jax.random.split(key)
    bound = 1.0 / jnp.sqrt(jnp.float32(input_size))
    w = jax.random.uniform(kw, (out_features, input_size), jnp.float32,
                           minval=-bound, maxval=bound)  # PyTorch layout [out, in]
    b = jax.random.uniform(kb, (out_features,), jnp.float32,
                           minval=-bound, maxval=bound)
    return w, b


if __name__ == "__main__":
    key = jax.random.PRNGKey(0)
    k_x, k_p, k_x2 = jax.random.split(key, 3)

    input_size = 4096  # module default
    out_features = 3
    w, b = init_params(k_p, input_size=input_size, out_features=out_features)

    # Small-batch path: single whole-array VMEM block, no grid.
    batch = 8
    x = jax.random.normal(k_x, (batch, input_size), jnp.float32)
    y = binary_classifier_forward(x, w, b)
    jax.block_until_ready(y)
    y_ref = x @ w.T + b
    assert y.shape == (batch, out_features)
    # bf16 MXU with f32 accumulation: loosened tolerance vs f32 reference.
    assert jnp.allclose(y, y_ref, atol=3e-2, rtol=3e-2), \
        float(jnp.max(jnp.abs(y - y_ref)))

    # Pipelined path with a ragged batch (384 = 2*256 + 128 partial block).
    batch_big = 384
    x2 = jax.random.normal(k_x2, (batch_big, input_size), jnp.float32)
    y2 = binary_classifier_forward(x2, w, b, block_b=256)
    jax.block_until_ready(y2)
    y2_ref = x2 @ w.T + b
    assert y2.shape == (batch_big, out_features)
    assert jnp.allclose(y2, y2_ref, atol=3e-2, rtol=3e-2), \
        float(jnp.max(jnp.abs(y2 - y2_ref)))

    print("KERNEL_OK")
</pallas_src>

<mosaic_0001>
module attributes {stable_mosaic.version = 11 : i64} {
  func.func @_linear_kernel(%arg0: memref<8x4096xf32, #tpu.memory_space<vmem>>, %arg1: memref<3x4096xbf16, #tpu.memory_space<vmem>>, %arg2: memref<3x1xf32, #tpu.memory_space<vmem>>, %arg3: memref<3x8xf32, #tpu.memory_space<vmem>>) attributes {dimension_semantics = [], scalar_prefetch = 0 : i64, scratch_operands = 0 : i64, tpu.core_type = #tpu.core_type<tc>} {
    %c0 = arith.constant 0 : index
    %c0_0 = arith.constant 0 : index
    %0 = vector.load %arg0[%c0, %c0_0] : memref<8x4096xf32, #tpu.memory_space<vmem>>, vector<8x4096xf32>
    %1 = arith.truncf %0 : vector<8x4096xf32> to vector<8x4096xbf16>
    %c0_1 = arith.constant 0 : index
    %c0_2 = arith.constant 0 : index
    %2 = vector.load %arg1[%c0_1, %c0_2] : memref<3x4096xbf16, #tpu.memory_space<vmem>>, vector<3x4096xbf16>
    %cst = arith.constant dense<0.000000e+00> : vector<3x8xf32>
    %3 = tpu.matmul %2, %1, %cst {dimension_numbers = #tpu.dot_dimension_numbers<[1], [1], [0], [0], [0, 0, 1, 0], [], []>} : vector<3x4096xbf16>, vector<8x4096xbf16>, vector<3x8xf32> -> vector<3x8xf32>
    %c0_3 = arith.constant 0 : index
    %c0_4 = arith.constant 0 : index
    %4 = vector.load %arg2[%c0_3, %c0_4] : memref<3x1xf32, #tpu.memory_space<vmem>>, vector<3x1xf32>
    %5 = vector.broadcast %4 : vector<3x1xf32> to vector<3x8xf32>
    %6 = arith.addf %3, %5 : vector<3x8xf32>
    %c0_5 = arith.constant 0 : index
    %c0_6 = arith.constant 0 : index
    %7 = vector.load %arg3[%c0_5, %c0_6] : memref<3x8xf32, #tpu.memory_space<vmem>>, vector<3x8xf32>
    tpu.vector_store %arg3[%c0_5, %c0_6], %6 {strides = array<i32>} : memref<3x8xf32, #tpu.memory_space<vmem>>, vector<3x8xf32>,
    return
  }
}

</mosaic_0001>

<bundles_post_ra>
// kernel: tpu_custom_call.1
= control target key start
LH: loop header
LB: loop body
LE: loop exit
PB: predicated region body
PF: predicated region fallthrough
CT: control target
= control target key end

     0   :  { %8 = vsyncpa [#allocation3], 0  ;;  %s1087_s0 = inlined_call_operand.hbm [shape: f32[8,4096], index: 0, kind: input, shape index: {}]   ;;  %s1088_s1 = inlined_call_operand.hbm [shape: bf16[3,4096], index: 1, kind: input, shape index: {}]   ;;  %s1089_s2 = inlined_call_operand.vmem [shape: f32[3,1], index: 2, kind: input, shape index: {}]   ;;  %s1090_s3 = inlined_call_operand.hbm [shape: f32[3,8], index: 3, kind: output, shape index: {}]  }
   0x1   :  { %9 = vsyncpa [#allocation6], 0 }
   0x2   :  { %10 = vsyncpa [#allocation4], 0  ;;  %s1032_s12 = smov [#allocation2]   ;;  %s1033_s14 = smov [#allocation5]  }
   0x3   :  { %s17_s13 = sshll.u32 %s1032_s12, 4  ;;  %s27_s15 = sshll.u32 %s1033_s14, 4  ;;  %s18_s13 = int_to_ptr.vmem [resolvable:$true] %s17_s13  ;;  %s28_s15 = int_to_ptr.vmem [resolvable:$true] %s27_s15 }
   0x4   :  { %s974_s16 = scalar_lea.vmem %s18_s13, 4096  ;;  %p979_p1 = scmp.lt.s32.totalorder %s18_s13, %s18_s13 }
   0x5   :  { %p975_p0 = scmp.ne.s32.totalorder %s18_s13, %s974_s16  ;;  %p980_p2 = scmp.lt.s32.totalorder %s974_s16, %s974_s16 }
   0x7   :  { %p981_p3 = por %p980_p2, %p979_p1 }
   0x9   :  { %p982_p4 = pnand %p981_p3, %p975_p0 }
   0xb   :  { %985 = shalt.err (!%p982_p4)
}
   0xc   :  { %20 = dma.hbm_to_vmem [thread:$0]  %s1087_s0, 4096, %s18_s13, [#allocation3]  }
   0xd   :  { %s994_s19 = scalar_lea.vmem %s28_s15, 1024  ;;  %p999_p6 = scmp.lt.s32.totalorder %s28_s15, %s28_s15 }
   0xe   :  { %p995_p5 = scmp.ne.s32.totalorder %s28_s15, %s994_s19  ;;  %p1000_p7 = scmp.lt.s32.totalorder %s994_s19, %s994_s19 }
  0x10   :  { %p1001_p8 = por %p1000_p7, %p999_p6 }
  0x12   :  { %p1002_p9 = pnand %p1001_p8, %p995_p5 }
  0x14   :  { %1005 = shalt.err (!%p1002_p9)
}
  0x15   :  { %30 = dma.hbm_to_vmem [thread:$0]  %s1088_s1, 1024, %s28_s15, [#allocation6]  }
  0x16   :  { %1026 = dma.done.wait [#allocation3], 4096  }
  0x17   :  { %1027 = vsyncadd [#allocation3], 4294963200 }
  0x18   :  { %1028 = dma.done.wait [#allocation6], 1024  }
  0x19   :  { %1029 = vsyncadd [#allocation6], 4294966272  ;;  %v130_v0 = vlaneseq  ;;  %v1034_v1 = vmov 1983009808   ;;  %v1035_v3 = vmov 0   ;;  %v41_v7 = vld [vmem:[#allocation2 + $0x8] sm:$0xff] }
  0x1a   :  { %v128_v2 = vunpack.c.l.s4 %v1034_v1  ;;  %957 = vset.pattern.permute.xlu0 %v1035_v3  ;;  %v43_v8 = vld [vmem:[#allocation2 + $0x18] sm:$0xff]  ;;  %v40_v9 = vld [vmem:[#allocation2] sm:$0xff]  ;;  %v73_v10 = vpack.c.bf16 %v41_v7, %v41_v7  ;;  %v42_v13 = vld [vmem:[#allocation2 + $0x10] sm:$0xff]  ;;  %vm934_vm0 = vcmask 59392  }
  0x1b   :  { %v131_v4 = vshrl.u32 %v130_v0, 7  ;;  %v75_v11 = vpack.c.bf16 %v43_v8, %v43_v8  ;;  %v72_v12 = vpack.c.bf16 %v40_v9, %v40_v9  ;;  %v104_v14 = vld [vmem:[#allocation5] sm:$0xff]  ;;  %v45_v15 = vld [vmem:[#allocation2 + $0x28] sm:$0xff]  ;;  %v74_v16 = vpack.c.bf16 %v42_v13, %v42_v13  ;;  %v47_v20 = vld [vmem:[#allocation2 + $0x38] sm:$0xff] }
  0x1c   :  { %v129_v5 = vunpack.c.0.s8 %v128_v2  ;;  %v126_v18 = vcombine.high %v104_v14, %v104_v14  ;;  %v77_v19 = vpack.c.bf16 %v45_v15, %v45_v15  ;;  %308 = vmatprep.subr.bf16.mxu0 %v73_v10  ;;  %v79_v21 = vpack.c.bf16 %v47_v20, %v47_v20  ;;  %v105_v22 = vld [vmem:[#allocation5 + $0x8] sm:$0xff]  ;;  %v44_v25 = vld [vmem:[#allocation2 + $0x20] sm:$0xff]  ;;  %v46_v26 = vld [vmem:[#allocation2 + $0x30] sm:$0xff] }
  0x1d   :  { %348 = vmatprep.subr.bf16.mxu1 %v75_v11  ;;  %309 = vmatpush1.bf16.xpose.msra.mxu0 %v72_v12  ;;  %v143_v28 = vcombine.high %v105_v22, %v105_v22  ;;  %v106_v30 = vld [vmem:[#allocation5 + $0x10] sm:$0xff]  ;;  %v49_v32 = vld [vmem:[#allocation2 + $0x48] sm:$0xff]  ;;  %v51_v33 = vld [vmem:[#allocation2 + $0x58] sm:$0xff]  ;;  %v76_v34 = vpack.c.bf16 %v44_v25, %v44_v25  ;;  %v78_v35 = vpack.c.bf16 %v46_v26, %v46_v26 }
  0x1e   :  { %v1063_v6 = vsub.s32 %v129_v5, %v131_v4  ;;  %349 = vmatpush1.bf16.xpose.msra.mxu1 %v74_v16  ;;  %388 = vmatprep.subr.bf16.mxu0 %v77_v19  ;;  %v160_v38 = vcombine.high %v106_v30, %v106_v30  ;;  %v81_v39 = vpack.c.bf16 %v49_v32, %v49_v32  ;;  %v48_v41 = vld [vmem:[#allocation2 + $0x40] sm:$0xff]  ;;  %v50_v42 = vld [vmem:[#allocation2 + $0x50] sm:$0xff]  ;;  %v107_v46 = vld [vmem:[#allocation5 + $0x18] sm:$0xff] }
  0x1f   :  { %428 = vmatprep.subr.bf16.mxu1 %v79_v21  ;;  %v83_v40 = vpack.c.bf16 %v51_v33, %v51_v33  ;;  %v112_v45 = vld [vmem:[%s1089_s2] sm:$0x7]  ;;  %v53_v47 = vld [vmem:[#allocation2 + $0x68] sm:$0xff]  ;;  %v55_v48 = vld [vmem:[#allocation2 + $0x78] sm:$0xff]  ;;  %v80_v49 = vpack.c.bf16 %v48_v41, %v48_v41  ;;  %v82_v50 = vpack.c.bf16 %v50_v42, %v50_v42  ;;  %v177_v53 = vcombine.high %v107_v46, %v107_v46  ;;  %s1036_s2 = smov [#allocation7]  }
  0x20   :  { %v133_v17 = vrot.slane %v104_v14, %v1063_v6  ;;  %v140_v24 = vrot.slane %v126_v18, %v1063_v6  ;;  %v150_v27 = vrot.slane %v105_v22, %v1063_v6  ;;  %v157_v31 = vrot.slane %v143_v28, %v1063_v6  ;;  %115 = vperm.xlu0 %957, %v112_v45   ;;  %v52_v56 = vld [vmem:[#allocation2 + $0x60] sm:$0xff]  ;;  %v54_v57 = vld [vmem:[#allocation2 + $0x70] sm:$0xff]  ;;  %v57_v61 = vld [vmem:[#allocation2 + $0x88] sm:$0xff]  ;;  %s942_s22 = sshll.u32 %s1036_s2, 4  ;;  %s943_s22 = int_to_ptr.vmem [resolvable:$true] %s942_s22 }
  0x21   :  { %v167_v43 = vrot.slane %v106_v30, %v1063_v6  ;;  %v174_v44 = vrot.slane %v160_v38, %v1063_v6  ;;  %v85_v54 = vpack.c.bf16 %v53_v47, %v53_v47  ;;  %v87_v55 = vpack.c.bf16 %v55_v48, %v55_v48  ;;  %v108_v60 = vld [vmem:[#allocation5 + $0x20] sm:$0xff]  ;;  %v59_v62 = vld [vmem:[#allocation2 + $0x98] sm:$0xff]  ;;  %v58_v8 = vld [vmem:[#allocation2 + $0x90] sm:$0xff]  ;;  %s1006_s23 = scalar_lea.vmem %s943_s22, 64  ;;  %p1011_p11 = scmp.lt.s32.totalorder %s943_s22, %s943_s22 }
  0x22   :  { %v141_v23 = vcombine.high %v133_v17, %v133_v17  ;;  %v142_v29 = vcombine.high %v140_v24, %v140_v24  ;;  %v158_v36 = vcombine.high %v150_v27, %v150_v27  ;;  %v159_v37 = vcombine.high %v157_v31, %v157_v31  ;;  %v56_v7 = vld [vmem:[#allocation2 + $0x80] sm:$0xff]  ;;  %v109_v11 = vld [vmem:[#allocation5 + $0x28] sm:$0xff]  ;;  %v63_v13 = vld [vmem:[#allocation2 + $0xb8] sm:$0xff]  ;;  %p1007_p10 = scmp.ne.s32.totalorder %s943_s22, %s1006_s23  ;;  %p1012_p12 = scmp.lt.s32.totalorder %s1006_s23, %s1006_s23 }
  0x23   :  { %v175_v51 = vcombine.high %v167_v43, %v167_v43  ;;  %v176_v52 = vcombine.high %v174_v44, %v174_v44  ;;  %v184_v58 = vrot.slane %v107_v46, %v1063_v6  ;;  %v191_v59 = vrot.slane %v177_v53, %v1063_v6  ;;  %v61_v12 = vld [vmem:[#allocation2 + $0xa8] sm:$0xff]  ;;  %v60_v21 = vld [vmem:[#allocation2 + $0xa0] sm:$0xff]  ;;  %v62_v22 = vld [vmem:[#allocation2 + $0xb0] sm:$0xff] }
  0x24   :  { %326 = vmatprep.mubr.bf16.mxu0 %v141_v23  ;;  %366 = vmatprep.mubr.bf16.mxu1 %v142_v29  ;;  %v84_v63 = vpack.c.bf16 %v52_v56, %v52_v56  ;;  %v86_v0 = vpack.c.bf16 %v54_v57, %v54_v57  ;;  %v194_v3 = vcombine.high %v108_v60, %v108_v60  ;;  %v110_v25 = vld [vmem:[#allocation5 + $0x30] sm:$0xff]  ;;  %v65_v26 = vld [vmem:[#allocation2 + $0xc8] sm:$0xff]  ;;  %v71_v41 = vld [vmem:[#allocation2 + $0xf8] sm:$0xff]  ;;  %p1013_p13 = por %p1012_p12, %p1011_p11 }
  0x25   :  { %327 = vmatmul.mubr.bf16.vlgmr.msra.gmra.mxu0 %v133_v17  ;;  %367 = vmatmul.mubr.bf16.vlgmr.msra.gmra.mxu1 %v140_v24  ;;  %v192_v1 = vcombine.high %v184_v58, %v184_v58  ;;  %v193_v2 = vcombine.high %v191_v59, %v191_v59  ;;  %v89_v4 = vpack.c.bf16 %v57_v61, %v57_v61 }
  0x26   :  { %389 = vmatpush1.bf16.xpose.msra.mxu0 %v76_v34  ;;  %429 = vmatpush1.bf16.xpose.msra.mxu1 %v78_v35  ;;  %v91_v5 = vpack.c.bf16 %v59_v62, %v59_v62  ;;  %v201_v9 = vrot.slane %v108_v60, %v1063_v6  ;;  %v208_v10 = vrot.slane %v194_v3, %v1063_v6  ;;  %v64_v35 = vld [vmem:[#allocation2 + $0xc0] sm:$0xff]  ;;  %p1014_p0 = pnand %p1013_p13, %p1007_p10 }
  0x27   :  { %406 = vmatprep.mubr.bf16.mxu0 %v158_v36  ;;  %446 = vmatprep.mubr.bf16.mxu1 %v159_v37  ;;  %v88_v14 = vpack.c.bf16 %v56_v7, %v56_v7  ;;  %v90_v15 = vpack.c.bf16 %v58_v8, %v58_v8  ;;  %v211_v18 = vcombine.high %v109_v11, %v109_v11  ;;  %v66_v36 = vld [vmem:[#allocation2 + $0xd0] sm:$0xff] }
  0x28   :  { %468 = vmatprep.subr.bf16.mxu0 %v81_v39  ;;  %508 = vmatprep.subr.bf16.mxu1 %v83_v40  ;;  %v209_v16 = vcombine.high %v201_v9, %v201_v9  ;;  %v210_v17 = vcombine.high %v208_v10, %v208_v10  ;;  %v93_v19 = vpack.c.bf16 %v61_v12, %v61_v12  ;;  %v111_v39 = vld [vmem:[#allocation5 + $0x38] sm:$0xff]  ;;  %v69_v40 = vld [vmem:[#allocation2 + $0xe8] sm:$0xff] }
  0x29   :  { %v95_v20 = vpack.c.bf16 %v63_v13, %v63_v13  ;;  %v218_v23 = vrot.slane %v109_v11, %v1063_v6  ;;  %v225_v24 = vrot.slane %v211_v18, %v1063_v6  ;;  %v92_v28 = vpack.c.bf16 %v60_v21, %v60_v21 }
  0x2a   :  { %v94_v29 = vpack.c.bf16 %v62_v22, %v62_v22  ;;  %v228_v32 = vcombine.high %v110_v25, %v110_v25  ;;  %v97_v33 = vpack.c.bf16 %v65_v26, %v65_v26  ;;  %v235_v37 = vrot.slane %v110_v25, %v1063_v6 }
  0x2b   :  { %v226_v30 = vcombine.high %v218_v23, %v218_v23  ;;  %v96_v42 = vpack.c.bf16 %v64_v35, %v64_v35  ;;  %v245_v46 = vcombine.high %v111_v39, %v111_v39  ;;  %v101_v47 = vpack.c.bf16 %v69_v40, %v69_v40 }
  0x2c   :  { %v242_v38 = vrot.slane %v228_v32, %v1063_v6  ;;  %v103_v48 = vpack.c.bf16 %v71_v41, %v71_v41 }
  0x2d   :  { %407 = vmatmul.mubr.bf16.vlgmr.msra.gmra.mxu0 %v150_v27  ;;  %447 = vmatmul.mubr.bf16.vlgmr.msra.gmra.mxu1 %v157_v31  ;;  %v67_v27 = vld [vmem:[#allocation2 + $0xd8] sm:$0xff]  ;;  %v227_v31 = vcombine.high %v225_v24, %v225_v24 }
  0x2e   :  { %469 = vmatpush1.bf16.xpose.msra.mxu0 %v80_v49  ;;  %509 = vmatpush1.bf16.xpose.msra.mxu1 %v82_v50  ;;  %v99_v34 = vpack.c.bf16 %v67_v27, %v67_v27  ;;  %v244_v45 = vcombine.high %v242_v38, %v242_v38  ;;  %v68_v49 = vld [vmem:[#allocation2 + $0xe0] sm:$0xff]  ;;  %v70_v50 = vld [vmem:[#allocation2 + $0xf0] sm:$0xff] }
  0x2f   :  { %486 = vmatprep.mubr.bf16.mxu0 %v175_v51  ;;  %526 = vmatprep.mubr.bf16.mxu1 %v176_v52  ;;  %v252_v51 = vrot.slane %v111_v39, %v1063_v6  ;;  %v259_v52 = vrot.slane %v245_v46, %v1063_v6  ;;  %v100_v53 = vpack.c.bf16 %v68_v49, %v68_v49 }
  0x30   :  { %548 = vmatprep.subr.bf16.mxu0 %v85_v54  ;;  %588 = vmatprep.subr.bf16.mxu1 %v87_v55  ;;  %v102_v54 = vpack.c.bf16 %v70_v50, %v70_v50 }
  0x31   :  { %v260_v55 = vcombine.high %v252_v51, %v252_v51  ;;  %v261_v56 = vcombine.high %v259_v52, %v259_v52 }
  0x35   :  { %487 = vmatmul.mubr.bf16.vlgmr.msra.gmra.mxu0 %v167_v43  ;;  %527 = vmatmul.mubr.bf16.vlgmr.msra.gmra.mxu1 %v174_v44  ;;  %v98_v43 = vpack.c.bf16 %v66_v36, %v66_v36  ;;  %v243_v44 = vcombine.high %v235_v37, %v235_v37 }
  0x36   :  { %549 = vmatpush1.bf16.xpose.msra.mxu0 %v84_v63  ;;  %589 = vmatpush1.bf16.xpose.msra.mxu1 %v86_v0 }
  0x37   :  { %566 = vmatprep.mubr.bf16.mxu0 %v192_v1  ;;  %606 = vmatprep.mubr.bf16.mxu1 %v193_v2 }
  0x38   :  { %628 = vmatprep.subr.bf16.mxu0 %v89_v4  ;;  %668 = vmatprep.subr.bf16.mxu1 %v91_v5 }
  0x3d   :  { %567 = vmatmul.mubr.bf16.vlgmr.msra.gmra.mxu0 %v184_v58  ;;  %607 = vmatmul.mubr.bf16.vlgmr.msra.gmra.mxu1 %v191_v59 }
  0x3e   :  { %629 = vmatpush1.bf16.xpose.msra.mxu0 %v88_v14  ;;  %669 = vmatpush1.bf16.xpose.msra.mxu1 %v90_v15 }
  0x3f   :  { %646 = vmatprep.mubr.bf16.mxu0 %v209_v16  ;;  %686 = vmatprep.mubr.bf16.mxu1 %v210_v17 }
  0x40   :  { %708 = vmatprep.subr.bf16.mxu0 %v93_v19  ;;  %748 = vmatprep.subr.bf16.mxu1 %v95_v20 }
  0x45   :  { %647 = vmatmul.mubr.bf16.vlgmr.msra.gmra.mxu0 %v201_v9  ;;  %687 = vmatmul.mubr.bf16.vlgmr.msra.gmra.mxu1 %v208_v10 }
  0x46   :  { %709 = vmatpush1.bf16.xpose.msra.mxu0 %v92_v28  ;;  %749 = vmatpush1.bf16.xpose.msra.mxu1 %v94_v29 }
  0x47   :  { %726 = vmatprep.mubr.bf16.mxu0 %v226_v30  ;;  %766 = vmatprep.mubr.bf16.mxu1 %v227_v31 }
  0x48   :  { %788 = vmatprep.subr.bf16.mxu0 %v97_v33  ;;  %828 = vmatprep.subr.bf16.mxu1 %v99_v34 }
  0x4d   :  { %727 = vmatmul.mubr.bf16.vlgmr.msra.gmra.mxu0 %v218_v23  ;;  %767 = vmatmul.mubr.bf16.vlgmr.msra.gmra.mxu1 %v225_v24 }
  0x4e   :  { %789 = vmatpush1.bf16.xpose.msra.mxu0 %v96_v42  ;;  %829 = vmatpush1.bf16.xpose.msra.mxu1 %v98_v43 }
  0x4f   :  { %806 = vmatprep.mubr.bf16.mxu0 %v243_v44  ;;  %846 = vmatprep.mubr.bf16.mxu1 %v244_v45 }
  0x50   :  { %868 = vmatprep.subr.bf16.mxu0 %v101_v47  ;;  %908 = vmatprep.subr.bf16.mxu1 %v103_v48 }
  0x55   :  { %807 = vmatmul.mubr.bf16.vlgmr.msra.gmra.mxu0 %v235_v37  ;;  %847 = vmatmul.mubr.bf16.vlgmr.msra.gmra.mxu1 %v242_v38 }
  0x56   :  { %869 = vmatpush1.bf16.xpose.msra.mxu0 %v100_v53  ;;  %909 = vmatpush1.bf16.xpose.msra.mxu1 %v102_v54 }
  0x57   :  { %886 = vmatprep.mubr.bf16.mxu0 %v260_v55  ;;  %926 = vmatprep.mubr.bf16.mxu1 %v261_v56 }
  0x5d   :  { %887 = vmatmul.mubr.bf16.vlgmr.msra.gmra.mxu0 %v252_v51  ;;  %927 = vmatmul.mubr.bf16.vlgmr.msra.gmra.mxu1 %v259_v52 }
  0x9b   :  { %v116_v4 = vpop.permute.xlu0 %115 }
  0xe5   :  { %v328_v57 = vpop.f32.mrf.mxu0  ;;  %v368_v58 = vpop.f32.mrf.mxu1 }
  0xe6   :  { %v329_v10 = vadd.f32 %v328_v57, %v116_v4 }
  0xe7   :  { %v330_v59 = vpop.f32.mrf.mxu0  ;;  %v370_v60 = vpop.f32.mrf.mxu1 }
  0xe8   :  { %v369_v15 = vadd.f32 %v368_v58, %v329_v10 }
  0xe9   :  { %v331_v61 = vpop.f32.mrf.mxu0  ;;  %v371_v6 = vpop.f32.mrf.mxu1 }
  0xeb   :  { %v332_v62 = vpop.f32.mrf.mxu0  ;;  %v372_v63 = vpop.f32.mrf.mxu1 }
  0xed   :  { %v408_v0 = vpop.f32.mrf.mxu0  ;;  %v448_v1 = vpop.f32.mrf.mxu1 }
  0xee   :  { %v409_v18 = vadd.f32 %v408_v0, %v369_v15 }
  0xef   :  { %v410_v2 = vpop.f32.mrf.mxu0  ;;  %v450_v3 = vpop.f32.mrf.mxu1 }
  0xf0   :  { %v449_v23 = vadd.f32 %v448_v1, %v409_v18 }
  0xf1   :  { %v411_v5 = vpop.f32.mrf.mxu0  ;;  %v451_v7 = vpop.f32.mrf.mxu1 }
  0xf3   :  { %v412_v8 = vpop.f32.mrf.mxu0  ;;  %v452_v9 = vpop.f32.mrf.mxu1 }
  0xf5   :  { %v488_v11 = vpop.f32.mrf.mxu0  ;;  %v528_v12 = vpop.f32.mrf.mxu1 }
  0xf6   :  { %v489_v26 = vadd.f32 %v488_v11, %v449_v23 }
  0xf7   :  { %v490_v13 = vpop.f32.mrf.mxu0  ;;  %v530_v14 = vpop.f32.mrf.mxu1 }
  0xf8   :  { %v529_v31 = vadd.f32 %v528_v12, %v489_v26 }
  0xf9   :  { %v491_v16 = vpop.f32.mrf.mxu0  ;;  %v531_v17 = vpop.f32.mrf.mxu1 }
  0xfb   :  { %v492_v19 = vpop.f32.mrf.mxu0  ;;  %v532_v20 = vpop.f32.mrf.mxu1 }
  0xfd   :  { %v568_v21 = vpop.f32.mrf.mxu0  ;;  %v608_v22 = vpop.f32.mrf.mxu1 }
  0xfe   :  { %v569_v34 = vadd.f32 %v568_v21, %v529_v31 }
  0xff   :  { %v570_v24 = vpop.f32.mrf.mxu0  ;;  %v610_v25 = vpop.f32.mrf.mxu1 }
 0x100   :  { %v609_v39 = vadd.f32 %v608_v22, %v569_v34 }
 0x101   :  { %v571_v27 = vpop.f32.mrf.mxu0  ;;  %v611_v28 = vpop.f32.mrf.mxu1 }
 0x103   :  { %v572_v29 = vpop.f32.mrf.mxu0  ;;  %v612_v30 = vpop.f32.mrf.mxu1 }
 0x105   :  { %v648_v32 = vpop.f32.mrf.mxu0  ;;  %v688_v33 = vpop.f32.mrf.mxu1 }
 0x106   :  { %v649_v42 = vadd.f32 %v648_v32, %v609_v39 }
 0x107   :  { %v650_v35 = vpop.f32.mrf.mxu0  ;;  %v690_v36 = vpop.f32.mrf.mxu1 }
 0x108   :  { %v689_v47 = vadd.f32 %v688_v33, %v649_v42 }
 0x109   :  { %v651_v37 = vpop.f32.mrf.mxu0  ;;  %v691_v38 = vpop.f32.mrf.mxu1 }
 0x10b   :  { %v652_v40 = vpop.f32.mrf.mxu0  ;;  %v692_v41 = vpop.f32.mrf.mxu1 }
 0x10d   :  { %v728_v43 = vpop.f32.mrf.mxu0  ;;  %v768_v44 = vpop.f32.mrf.mxu1 }
 0x10e   :  { %v729_v50 = vadd.f32 %v728_v43, %v689_v47 }
 0x10f   :  { %v730_v45 = vpop.f32.mrf.mxu0  ;;  %v770_v46 = vpop.f32.mrf.mxu1 }
 0x110   :  { %v769_v55 = vadd.f32 %v768_v44, %v729_v50 }
 0x111   :  { %v731_v48 = vpop.f32.mrf.mxu0  ;;  %v771_v49 = vpop.f32.mrf.mxu1 }
 0x113   :  { %v732_v51 = vpop.f32.mrf.mxu0  ;;  %v772_v52 = vpop.f32.mrf.mxu1 }
 0x115   :  { %v808_v53 = vpop.f32.mrf.mxu0  ;;  %v848_v54 = vpop.f32.mrf.mxu1 }
 0x116   :  { %v809_v58 = vadd.f32 %v808_v53, %v769_v55 }
 0x117   :  { %v810_v56 = vpop.f32.mrf.mxu0  ;;  %v850_v57 = vpop.f32.mrf.mxu1 }
 0x118   :  { %v849_v62 = vadd.f32 %v848_v54, %v809_v58 }
 0x119   :  { %v811_v59 = vpop.f32.mrf.mxu0  ;;  %v851_v60 = vpop.f32.mrf.mxu1 }
 0x11b   :  { %v812_v61 = vpop.f32.mrf.mxu0  ;;  %v852_v6 = vpop.f32.mrf.mxu1 }
 0x11d   :  { %v888_v63 = vpop.f32.mrf.mxu0  ;;  %v928_v0 = vpop.f32.mrf.mxu1 }
 0x11e   :  { %v889_v1 = vadd.f32 %v888_v63, %v849_v62 }
 0x11f   :  { %v890_v2 = vpop.f32.mrf.mxu0  ;;  %v930_v3 = vpop.f32.mrf.mxu1 }
 0x120   :  { %v929_v4 = vadd.f32 %v928_v0, %v889_v1 }
 0x121   :  { %v891_v5 = vpop.f32.mrf.mxu0  ;;  %v931_v7 = vpop.f32.mrf.mxu1 }
 0x122   :  { %935 = vst.msk [vmem:[#allocation7] sm:$0x7] %vm934_vm0, %v929_v4 }
 0x123   :  { %v892_v8 = vpop.f32.mrf.mxu0  ;;  %v932_v9 = vpop.f32.mrf.mxu1 }
 0x124   :  { %1017 = shalt.err (!%p1014_p0)
}
 0x125   :  { %945 = dma.vmem_to_hbm [thread:$0]  %s943_s22, 64, %s1090_s3, [#allocation4]  }
 0x126   :  { %1030 = dma.done.wait [#allocation4], 64  }
 0x127   :  { %1031 = vsyncadd [#allocation4], 4294967232 }
 0x128   :  { %949 = vsyncpa [#allocation3], 1 }
 0x129   :  { %950 = vsyncpa [#allocation6], 1 }
 0x12a   :  { %951 = vsyncpa [#allocation4], 1 }

</bundles_post_ra>
